<compile_context>
chip_gen: v7x
topology: tpu7x:2x2x1
jax: 0.10.0
libtpu: 0.0.40
codegen_flags: <defaults>
</compile_context>

<pallas_src>
import jax
import jax.numpy as jnp
from jax.experimental import pallas as pl
from jax.experimental.pallas import tpu as pltpu


def _cdiv(a: int, b: int) -> int:
    return -(-a // b)


def _round_up(n: int, m: int) -> int:
    return _cdiv(n, m) * m


# ---------------------------------------------------------------------------
# Kernels
# ---------------------------------------------------------------------------
def _cpm_kernel_direct(x_ref, vt_ref, bias_ref, o_ref):
    """f32 output: accumulate straight into the resident output tile.

    x_ref:    (bm, tk)   batch tile of the (padded) input
    vt_ref:   (tk, bn)   tile of vectors.T with 1/norm pre-folded into columns
    bias_ref: (1,  bn)   intercepts/norms row vector
    o_ref:    (bm, bn)   f32 output tile (resident across the k axis)
    """
    k = pl.program_id(2)

    @pl.when(k == 0)
    def _():
        o_ref[...] = jnp.broadcast_to(bias_ref[...], o_ref.shape)

    o_ref[...] += jnp.dot(x_ref[...], vt_ref[...],
                          preferred_element_type=jnp.float32)


def _cpm_kernel_acc(x_ref, vt_ref, bias_ref, o_ref, acc_ref):
    """Non-f32 output: f32 accumulator scratch, cast on the last k step."""
    k = pl.program_id(2)

    @pl.when(k == 0)
    def _():
        acc_ref[...] = jnp.broadcast_to(bias_ref[...], acc_ref.shape)

    acc_ref[...] += jnp.dot(x_ref[...], vt_ref[...],
                            preferred_element_type=jnp.float32)

    @pl.when(k == pl.num_programs(2) - 1)
    def _():
        o_ref[...] = acc_ref[...].astype(o_ref.dtype)


# ---------------------------------------------------------------------------
# Factory: one-time weight prep + jitted projection callable
# ---------------------------------------------------------------------------
def make_concept_projection(
    vectors,
    intercepts,
    norms,
    *,
    bm: int = 512,                  # batch tile (multiple of 8)
    bn: int = 512,                  # concept tile (multiple of 128)
    tk: int = 1024,                 # reduction tile over the embedding dim (multiple of 128)
    compute_dtype=jnp.bfloat16,     # matmul input dtype; None -> pure f32
    vt_buffers: int = 2,            # weight-stream pipeline depth; try 3 when bm_eff<=64
):
    """Prepares the concept bank once and returns `project(x) -> (B, C)`."""
    vectors = jnp.asarray(vectors, jnp.float32)
    C, D = vectors.shape
    icpt = jnp.reshape(jnp.asarray(intercepts, jnp.float32), (-1,))
    nrm = jnp.reshape(jnp.asarray(norms, jnp.float32), (-1,))
    assert icpt.shape[0] == C and nrm.shape[0] == C

    # Hardware-align the requested tiles.
    bm = max(8, _round_up(bm, 8))
    bn = max(128, _round_up(bn, 128))
    tk = max(128, _round_up(tk, 128))

    # Pad concept / embedding dims to tile multiples (done ONCE at setup).
    c_pad = _round_up(C, 128)
    bn_eff = min(bn, c_pad)
    c_pad = _round_up(c_pad, bn_eff)

    d_pad = _round_up(D, 128)
    tk_eff = min(tk, d_pad)
    d_pad = _round_up(d_pad, tk_eff)

    # Fold 1/norm into the weight columns in f32 *before* any low-precision cast;
    # padded rows / columns are zero so they contribute nothing to the dot product.
    inv_norm = 1.0 / nrm                                             # (C,)
    vt = jnp.zeros((d_pad, c_pad), dtype=jnp.float32)
    vt = vt.at[:D, :C].set(jnp.transpose(vectors) * inv_norm[None, :])
    bias = jnp.zeros((1, c_pad), dtype=jnp.float32)
    bias = bias.at[0, :C].set(icpt * inv_norm)                       # intercepts/norms

    if compute_dtype is not None:
        vt = vt.astype(compute_dtype)

    def project(x):
        B, Dx = x.shape
        assert Dx == D, f"dim mismatch: x has D={Dx}, concept bank has D={D}"
        out_dtype = x.dtype
        direct = jnp.dtype(out_dtype) == jnp.dtype(jnp.float32)

        xc = x.astype(compute_dtype) if compute_dtype is not None else x

        # Balanced batch tiles: minimal padding for unlucky batch sizes.
        n_bt = max(1, _cdiv(B, bm))
        bm_eff = max(8, _round_up(_cdiv(B, n_bt), 8))
        b_pad = _round_up(B, bm_eff)

        # v7x megacore: make sure the two "parallel" axes expose >= 2 blocks in total
        # (neutral on single-TensorCore v5e/v6e).
        bn_call = bn_eff
        if (b_pad // bm_eff) * (c_pad // bn_call) == 1:
            if bn_call % 256 == 0:
                bn_call //= 2
            elif c_pad >= 256:
                bn_call = 128
            elif B > 8:
                bm_eff = max(8, _round_up(_cdiv(B, 2), 8))
                b_pad = _round_up(B, bm_eff)

        # Zero-pad x only when actually needed (padded rows produce garbage rows that
        # are sliced off; padded embedding columns multiply zero weight rows).
        if (b_pad, d_pad) != (B, Dx):
            xp = jnp.zeros((b_pad, d_pad), dtype=xc.dtype)
            xc = xp.at[:B, :Dx].set(xc)

        grid = (b_pad // bm_eff, c_pad // bn_call, d_pad // tk_eff)

        x_it = jnp.dtype(xc.dtype).itemsize
        vt_it = jnp.dtype(vt.dtype).itemsize
        out_it = jnp.dtype(out_dtype).itemsize

        # Explicit scoped-VMEM budget with headroom (kept well under v7x's 64 MiB
        # physical VMEM; v5e/v6e have 128 MiB physical).
        footprint = (
            2 * bm_eff * tk_eff * x_it
            + max(2, vt_buffers) * tk_eff * bn_call * vt_it
            + 2 * 8 * bn_call * 4                       # bias tile (sublane-padded)
            + 2 * bm_eff * bn_call * out_it
            + (0 if direct else bm_eff * bn_call * 4)   # acc scratch
        )
        vmem_limit = min(48 << 20, max(32 << 20, int(footprint * 1.5) + (4 << 20)))

        cost = pl.CostEstimate(
            flops=2 * b_pad * d_pad * c_pad,
            transcendentals=0,
            bytes_accessed=(
                x_it * b_pad * d_pad * (c_pad // bn_call)
                + vt_it * d_pad * c_pad * (b_pad // bm_eff)
                + 4 * c_pad
                + out_it * b_pad * c_pad
            ),
        )

        # Weight-stream BlockSpec; optional deeper pipelining for the mem-bound
        # small-batch regime (vt_buffers=3), default is standard double buffering.
        if vt_buffers != 2:
            vt_spec = pl.BlockSpec((tk_eff, bn_call), lambda i, j, k: (k, j),
                                   pipeline_mode=pl.Buffered(vt_buffers))
        else:
            vt_spec = pl.BlockSpec((tk_eff, bn_call), lambda i, j, k: (k, j))

        kernel = _cpm_kernel_direct if direct else _cpm_kernel_acc
        scratch = [] if direct else [pltpu.VMEM((bm_eff, bn_call), jnp.float32)]

        out = pl.pallas_call(
            kernel,
            out_shape=jax.ShapeDtypeStruct((b_pad, c_pad), out_dtype),
            grid_spec=pltpu.PrefetchScalarGridSpec(
                num_scalar_prefetch=0,
                grid=grid,
                in_specs=[
                    pl.BlockSpec((bm_eff, tk_eff), lambda i, j, k: (i, k)),  # x tile
                    vt_spec,                                                 # weights
                    pl.BlockSpec((1, bn_call), lambda i, j, k: (0, j)),      # bias row
                ],
                out_specs=pl.BlockSpec((bm_eff, bn_call), lambda i, j, k: (i, j)),
                scratch_shapes=scratch,
            ),
            compiler_params=pltpu.CompilerParams(
                dimension_semantics=("parallel", "parallel", "arbitrary"),
                vmem_limit_bytes=vmem_limit,
            ),
            cost_estimate=cost,
        )(xc, vt, bias)

        # Skip the extra HBM pass when no padding was added.
        if (B, C) == (b_pad, c_pad):
            return out
        return out[:B, :C]

    return jax.jit(project)


def concept_projection(x, vectors, intercepts, norms, **kwargs):
    """One-shot convenience wrapper (re-does weight prep per call — prefer the
    factory `make_concept_projection` for repeated forward passes)."""
    return make_concept_projection(vectors, intercepts, norms, **kwargs)(x)


def _reference_f32(x, vectors, intercepts, norms):
    # Pure-JAX replica of the PyTorch forward (f32).
    return jnp.transpose((vectors @ x.T + intercepts) / norms)


if __name__ == "__main__":
    key = jax.random.PRNGKey(0)

    # --- Case 1: tiny shapes, pure-f32 path (compute_dtype=None), tight check. ---
    B, D, C = 8, 32, 16
    kx, kv, ki, kn, key = jax.random.split(key, 5)
    x = jax.random.normal(kx, (B, D), dtype=jnp.float32)
    v = jax.random.normal(kv, (C, D), dtype=jnp.float32)
    icpt = jax.random.normal(ki, (C, 1), dtype=jnp.float32)
    nrm = jax.random.uniform(kn, (C, 1), dtype=jnp.float32, minval=0.5, maxval=2.0)

    proj_f32 = make_concept_projection(v, icpt, nrm, compute_dtype=None)
    out = jax.block_until_ready(proj_f32(x))
    ref = _reference_f32(x, v, icpt, nrm)
    assert out.shape == (B, C)
    assert jnp.allclose(out, ref, atol=1e-4, rtol=1e-4), "mismatch (f32 small)"

    # --- Case 2: padding + multi-k grid + concept-axis split, default bf16 compute.
    B2, D2, C2 = 20, 300, 170
    kx, kv, ki, kn, key = jax.random.split(key, 5)
    x2 = jax.random.normal(kx, (B2, D2), dtype=jnp.float32)
    v2 = jax.random.normal(kv, (C2, D2), dtype=jnp.float32)
    i2 = jax.random.normal(ki, (C2, 1), dtype=jnp.float32)
    n2 = jax.random.uniform(kn, (C2, 1), dtype=jnp.float32, minval=0.5, maxval=2.0)

    proj_bf16 = make_concept_projection(v2, i2, n2, tk=128)   # bf16 compute by default
    out2 = jax.block_until_ready(proj_bf16(x2))
    assert out2.shape == (B2, C2) and out2.dtype == jnp.float32
    # Reference with matched bf16 inputs / f32 accumulation (same fold order).
    inv2 = (1.0 / n2).reshape(1, C2)
    vt2 = (v2.T * inv2).astype(jnp.bfloat16)
    ref2m = jnp.dot(x2.astype(jnp.bfloat16), vt2,
                    preferred_element_type=jnp.float32) + i2.reshape(1, C2) * inv2
    assert jnp.allclose(out2, ref2m, atol=2e-3, rtol=2e-3), "mismatch (bf16 matched)"
    # Loose sanity check against the f32 PyTorch-style reference (bf16 input rounding).
    ref2 = _reference_f32(x2, v2, i2, n2)
    assert jnp.allclose(out2, ref2, atol=1.0, rtol=0.05), "mismatch (bf16 vs f32 ref)"

    # --- Case 3: bf16 in/out -> acc-scratch kernel, no padding, batch-axis split. ---
    B3, D3, C3 = 16, 128, 128
    kx, kv, ki, kn, key = jax.random.split(key, 5)
    x3 = jax.random.normal(kx, (B3, D3), dtype=jnp.float32).astype(jnp.bfloat16)
    v3 = jax.random.normal(kv, (C3, D3), dtype=jnp.float32)
    i3 = jax.random.normal(ki, (C3, 1), dtype=jnp.float32)
    n3 = jax.random.uniform(kn, (C3, 1), dtype=jnp.float32, minval=0.5, maxval=2.0)

    proj3 = make_concept_projection(v3, i3, n3)
    out3 = jax.block_until_ready(proj3(x3))
    assert out3.shape == (B3, C3) and out3.dtype == jnp.bfloat16
    inv3 = (1.0 / n3).reshape(1, C3)
    vt3 = (v3.T * inv3).astype(jnp.bfloat16)
    ref3m = (jnp.dot(x3, vt3, preferred_element_type=jnp.float32)
             + i3.reshape(1, C3) * inv3).astype(jnp.bfloat16)
    assert jnp.allclose(out3.astype(jnp.float32), ref3m.astype(jnp.float32),
                        atol=1e-2, rtol=1e-2), "mismatch (bf16 output)"

    print("KERNEL_OK")
</pallas_src>

<mosaic_0001>
module attributes {stable_mosaic.version = 11 : i64} {
  func.func @_cpm_kernel_direct(%arg0: i32, %arg1: i32, %arg2: i32, %arg3: memref<8x128xf32, #tpu.memory_space<vmem>>, %arg4: memref<128x128xf32, #tpu.memory_space<vmem>>, %arg5: memref<1x128xf32, #tpu.memory_space<vmem>>, %arg6: memref<8x128xf32, #tpu.memory_space<vmem>>) attributes {dimension_semantics = [#tpu.dimension_semantics<parallel>, #tpu.dimension_semantics<parallel>, #tpu.dimension_semantics<arbitrary>], iteration_bounds = array<i64: 1, 1, 1>, scalar_prefetch = 0 : i64, scratch_operands = 0 : i64, tpu.core_type = #tpu.core_type<tc>, window_params = [{transform_indices = @transform_0, window_bounds = array<i64: 8, 128>}, {transform_indices = @transform_1, window_bounds = array<i64: 128, 128>}, {transform_indices = @transform_2, window_bounds = array<i64: 1, 128>}, {transform_indices = @transform_3, window_bounds = array<i64: 8, 128>}]} {
    %c0_i32 = arith.constant 0 : i32
    %0 = arith.cmpi eq, %arg2, %c0_i32 : i32
    %1 = arith.extui %0 : i1 to i32
    %c0_i32_0 = arith.constant 0 : i32
    %2 = arith.cmpi ne, %1, %c0_i32_0 : i32
    scf.if %2 {
      %c0_8 = arith.constant 0 : index
      %c0_9 = arith.constant 0 : index
      %9 = vector.load %arg5[%c0_8, %c0_9] : memref<1x128xf32, #tpu.memory_space<vmem>>, vector<1x128xf32>
      %10 = vector.shape_cast %9 : vector<1x128xf32> to vector<1x128xf32>
      %11 = vector.broadcast %10 : vector<1x128xf32> to vector<8x128xf32>
      %c0_10 = arith.constant 0 : index
      %c0_11 = arith.constant 0 : index
      %12 = vector.load %arg6[%c0_10, %c0_11] : memref<8x128xf32, #tpu.memory_space<vmem>>, vector<8x128xf32>
      tpu.vector_store %arg6[%c0_10, %c0_11], %11 {strides = array<i32>} : memref<8x128xf32, #tpu.memory_space<vmem>>, vector<8x128xf32>,
    } else {
    }
    %c0 = arith.constant 0 : index
    %c0_1 = arith.constant 0 : index
    %3 = vector.load %arg6[%c0, %c0_1] : memref<8x128xf32, #tpu.memory_space<vmem>>, vector<8x128xf32>
    %c0_2 = arith.constant 0 : index
    %c0_3 = arith.constant 0 : index
    %4 = vector.load %arg3[%c0_2, %c0_3] : memref<8x128xf32, #tpu.memory_space<vmem>>, vector<8x128xf32>
    %c0_4 = arith.constant 0 : index
    %c0_5 = arith.constant 0 : index
    %5 = vector.load %arg4[%c0_4, %c0_5] : memref<128x128xf32, #tpu.memory_space<vmem>>, vector<128x128xf32>
    %cst = arith.constant dense<0.000000e+00> : vector<8x128xf32>
    %6 = tpu.matmul %4, %5, %cst {dimension_numbers = #tpu.dot_dimension_numbers<[1], [0], [0], [1], [0, 0, 1, 1], [], []>} : vector<8x128xf32>, vector<128x128xf32>, vector<8x128xf32> -> vector<8x128xf32>
    %7 = arith.addf %3, %6 : vector<8x128xf32>
    %c0_6 = arith.constant 0 : index
    %c0_7 = arith.constant 0 : index
    %8 = vector.load %arg6[%c0_6, %c0_7] : memref<8x128xf32, #tpu.memory_space<vmem>>, vector<8x128xf32>
    tpu.vector_store %arg6[%c0_6, %c0_7], %7 {strides = array<i32>} : memref<8x128xf32, #tpu.memory_space<vmem>>, vector<8x128xf32>,
    return
  }
  func.func @transform_0(%arg0: i32, %arg1: i32, %arg2: i32) -> (i32, i32) {
    %c0_i32 = arith.constant 0 : i32
    return %arg0, %arg2 : i32, i32
  }
  func.func @transform_1(%arg0: i32, %arg1: i32, %arg2: i32) -> (i32, i32) {
    %c0_i32 = arith.constant 0 : i32
    return %arg2, %arg1 : i32, i32
  }
  func.func @transform_2(%arg0: i32, %arg1: i32, %arg2: i32) -> (i32, i32) {
    %c0_i32 = arith.constant 0 : i32
    %c0_i32_0 = arith.constant 0 : i32
    return %c0_i32, %arg1 : i32, i32
  }
  func.func @transform_3(%arg0: i32, %arg1: i32, %arg2: i32) -> (i32, i32) {
    %c0_i32 = arith.constant 0 : i32
    return %arg0, %arg1 : i32, i32
  }
}

</mosaic_0001>

<bundles_post_ra>
// kernel: project.1
= control target key start
LH: loop header
LB: loop body
LE: loop exit
PB: predicated region body
PF: predicated region fallthrough
CT: control target
= control target key end

     0   :  { %8 = vsyncpa [#allocation3], 0  ;;  %s335_s0 = inlined_call_operand.vmem [shape: f32[8,128], index: 0, kind: input, shape index: {}]   ;;  %s336_s1 = inlined_call_operand.hbm [shape: f32[128,128], index: 1, kind: input, shape index: {}]   ;;  %s337_s2 = inlined_call_operand.vmem [shape: f32[1,128], index: 2, kind: input, shape index: {}]   ;;  %s338_s3 = inlined_call_operand.hbm [shape: f32[8,128], index: 3, kind: output, shape index: {}]  }
   0x1   :  { %9 = vsyncpa [#allocation4], 0  ;;  %s278_s12 = smov [#allocation2]   ;;  %s230_s16 = scalar_lea.hbm %s336_s1, 2048 }
   0x2   :  { %s17_s13 = sshll.u32 %s278_s12, 4  ;;  %p231_p0 = scmp.ne.s32.totalorder %s336_s1, %s230_s16  ;;  %s18_s13 = int_to_ptr.vmem [resolvable:$true] %s17_s13 }
   0x3   :  { %p234_p1 = scmp.lt.u32.totalorder %s230_s16, %s336_s1 }
   0x5   :  { %p236_p2 = pnand %p234_p1, %p231_p0 }
   0x7   :  { %239 = shalt.err (!%p236_p2)
}
   0x8   :  { %s240_s21 = scalar_lea.vmem %s18_s13, 2048  ;;  %p245_p4 = scmp.lt.s32.totalorder %s18_s13, %s18_s13 }
   0x9   :  { %p241_p3 = scmp.ne.s32.totalorder %s18_s13, %s240_s21  ;;  %p246_p5 = scmp.lt.s32.totalorder %s240_s21, %s240_s21 }
   0xb   :  { %p247_p6 = por %p246_p5, %p245_p4 }
   0xd   :  { %p248_p7 = pnand %p247_p6, %p241_p3 }
   0xf   :  { %251 = shalt.err (!%p248_p7)
}
  0x10   :  { %s279_s22 = smov 128   ;;  %s280_s23 = smov 8  }
  0x11   :  { %23 = dma.hbm_to_vmem [thread:$0]  %s336_s1, 2048, %s18_s13, [#allocation3], %s279_s22, %s279_s22, %s280_s23  }
  0x12   :  { %274 = dma.done.wait [#allocation3], 2048  }
  0x13   :  { %275 = vsyncadd [#allocation3], 4294965248  ;;  %v281_v0 = vmov 0.0|0.0   ;;  %vm282_vm0 = vmmov 0   ;;  %v283_v1 = vmov 0.0   ;;  %v43_v2 = vld [vmem:[#allocation2] sm:$0xff] }
  0x14   :  { %199 = vmatprep.subr.bf16.mxu0 %v281_v0  ;;  %196 = vmatprep.mubr.msk.f32.mxu0 %vm282_vm0, %v283_v1  ;;  %v44_v3 = vld [vmem:[#allocation2 + $0x8] sm:$0xff]  ;;  %v45_v4 = vld [vmem:[#allocation2 + $0x10] sm:$0xff]  ;;  %v46_v6 = vld [vmem:[#allocation2 + $0x18] sm:$0xff]  ;;  %s284_s29 = smov [#allocation5]  }
  0x15   :  { %v200_v5 = vpack.c.bf16 %v44_v3, %v43_v2  ;;  %v203_v7 = vpack.c.bf16 %v46_v6, %v45_v4  ;;  %v47_v8 = vld [vmem:[#allocation2 + $0x20] sm:$0xff]  ;;  %v48_v9 = vld [vmem:[#allocation2 + $0x28] sm:$0xff]  ;;  %v49_v11 = vld [vmem:[#allocation2 + $0x30] sm:$0xff]  ;;  %s137_s30 = sshll.u32 %s284_s29, 4  ;;  %s138_s30 = int_to_ptr.vmem [resolvable:$true] %s137_s30 }
  0x16   :  { %v206_v10 = vpack.c.bf16 %v48_v9, %v47_v8  ;;  %v50_v12 = vld [vmem:[#allocation2 + $0x38] sm:$0xff]  ;;  %v51_v14 = vld [vmem:[#allocation2 + $0x40] sm:$0xff]  ;;  %v52_v15 = vld [vmem:[#allocation2 + $0x48] sm:$0xff]  ;;  %s252_s4 = scalar_lea.vmem %s138_s30, 128  ;;  %p257_p9 = scmp.lt.s32.totalorder %s138_s30, %s138_s30 }
  0x17   :  { %201 = vmatpush3.bf16.msra.mxu0 %v200_v5  ;;  %v209_v13 = vpack.c.bf16 %v50_v12, %v49_v11  ;;  %v212_v16 = vpack.c.bf16 %v52_v15, %v51_v14  ;;  %v53_v17 = vld [vmem:[#allocation2 + $0x50] sm:$0xff]  ;;  %v54_v18 = vld [vmem:[#allocation2 + $0x58] sm:$0xff]  ;;  %v55_v20 = vld [vmem:[#allocation2 + $0x60] sm:$0xff]  ;;  %p253_p8 = scmp.ne.s32.totalorder %s138_s30, %s252_s4  ;;  %p258_p10 = scmp.lt.s32.totalorder %s252_s4, %s252_s4 }
  0x18   :  { %202 = vmatprep.subr.bf16.mxu0 %v281_v0  ;;  %v215_v19 = vpack.c.bf16 %v54_v18, %v53_v17  ;;  %v56_v21 = vld [vmem:[#allocation2 + $0x68] sm:$0xff]  ;;  %v57_v23 = vld [vmem:[#allocation2 + $0x70] sm:$0xff]  ;;  %v58_v24 = vld [vmem:[#allocation2 + $0x78] sm:$0xff] }
  0x19   :  { %v218_v22 = vpack.c.bf16 %v56_v21, %v55_v20  ;;  %v221_v25 = vpack.c.bf16 %v58_v24, %v57_v23  ;;  %v42_v26 = vld [vmem:[%s335_s0] sm:$0xff]  ;;  %p259_p11 = por %p258_p10, %p257_p9 }
  0x1a   :  { %v146_v27 = vld [vmem:[%s337_s2] ss:$0 sm:$0xff] }
  0x1b   :  { %204 = vmatpush3.bf16.msra.mxu0 %v203_v7  ;;  %p260_p12 = pnand %p259_p11, %p253_p8 }
  0x1c   :  { %205 = vmatprep.subr.bf16.mxu0 %v281_v0 }
  0x1f   :  { %207 = vmatpush3.bf16.msra.mxu0 %v206_v10 }
  0x20   :  { %208 = vmatprep.subr.bf16.mxu0 %v281_v0 }
  0x23   :  { %210 = vmatpush3.bf16.msra.mxu0 %v209_v13 }
  0x24   :  { %211 = vmatprep.subr.bf16.mxu0 %v281_v0 }
  0x27   :  { %213 = vmatpush3.bf16.msra.mxu0 %v212_v16 }
  0x28   :  { %214 = vmatprep.subr.bf16.mxu0 %v281_v0 }
  0x2b   :  { %216 = vmatpush3.bf16.msra.mxu0 %v215_v19 }
  0x2c   :  { %217 = vmatprep.subr.bf16.mxu0 %v281_v0 }
  0x2f   :  { %219 = vmatpush3.bf16.msra.mxu0 %v218_v22 }
  0x30   :  { %220 = vmatprep.subr.bf16.mxu0 %v281_v0 }
  0x33   :  { %222 = vmatpush3.bf16.msra.mxu0 %v221_v25 }
  0x36   :  { %197 = vmatmul.mubr.f32.vlgmr.msra.gmra.mrb[0].mxu0 %v42_v26 }
 0x109   :  { %v125_v28 = vpop.f32.mrb[0].mxu0 }
 0x10a   :  { %v129_v29 = vadd.f32 %v146_v27, %v125_v28  ;;  %v198_v30 = vpop.f32.mrb[1].mxu0 }
 0x10c   :  { %130 = vst [vmem:[#allocation5] sm:$0xff] %v129_v29 }
 0x10d   :  { %263 = shalt.err (!%p260_p12)
}
 0x10e   :  { %s264_s6 = scalar_lea.hbm %s338_s3, 128 }
 0x10f   :  { %p265_p13 = scmp.ne.s32.totalorder %s338_s3, %s264_s6  ;;  %p268_p0 = scmp.lt.u32.totalorder %s264_s6, %s338_s3 }
 0x111   :  { %p270_p1 = pnand %p268_p0, %p265_p13 }
 0x113   :  { %273 = shalt.err (!%p270_p1)
}
 0x114   :  { %140 = dma.vmem_to_hbm [thread:$0]  %s138_s30, 128, %s338_s3, [#allocation4]  }
 0x115   :  { %276 = dma.done.wait [#allocation4], 128  }
 0x116   :  { %277 = vsyncadd [#allocation4], 4294967168 }
 0x117   :  { %144 = vsyncpa [#allocation3], 1 }
 0x118   :  { %145 = vsyncpa [#allocation4], 1 }

</bundles_post_ra>
